<compile_context>
chip_gen: v7x
topology: tpu7x:2x2x1
jax: 0.10.0
libtpu: 0.0.40
codegen_flags: <defaults>
</compile_context>

<pallas_src>
import functools
import math

import jax
import jax.numpy as jnp
import numpy as np
from jax.experimental import pallas as pl
from jax.experimental.pallas import tpu as pltpu

LOG2 = math.log(2.0)


# --------------------------------------------------------------------------- #
# Kernels
# --------------------------------------------------------------------------- #
def _mine_kernel_nchw(x_ref, w1_ref, b1_ref, w2_ref, b2_ref, w3_ref, b3_ref,
                      out_ref):
    """Fast path: grid = (batch, pixel-tile); pos/neg decided by batch index."""
    n = pl.program_id(0)
    n_half = pl.num_programs(0) // 2

    # x block: (1, C, tp); channels on sublanes, pixels on lanes.
    x = x_ref[0].astype(jnp.bfloat16)                        # (C, tp)

    # fc1 (1x1 conv): (C1, C) @ (C, tp) -> (C1, tp), f32 accumulation.
    h1 = jnp.dot(w1_ref[...], x, preferred_element_type=jnp.float32)
    # ReLU fused with bf16 cast: biggest live intermediate stored at half width.
    h1 = jnp.maximum(h1 + b1_ref[...], 0.0).astype(jnp.bfloat16)

    # fc2 (1x1 conv): (C2, C1) @ (C1, tp) -> (C2, tp).
    h2 = jnp.dot(w2_ref[...], h1, preferred_element_type=jnp.float32)
    h2 = jnp.maximum(h2 + b2_ref[...], 0.0)

    # fc3 (single output channel): VPU multiply + sublane reduce (MXU stays free).
    o = jnp.sum(h2 * w3_ref[...], axis=0, keepdims=True) + b3_ref[0, 0]  # (1, tp)

    # softplus(-o), numerically stable, f32.
    z = -o
    sp = jnp.maximum(z, 0.0) + jnp.log1p(jnp.exp(-jnp.abs(z)))

    is_pos = n < n_half
    out_ref[0] = jnp.where(is_pos, LOG2 - sp, sp + o - LOG2)  # (1, tp)


def _mine_kernel_flat(x_ref, w1_ref, b1_ref, w2_ref, b2_ref, w3_ref, b3_ref,
                      out_ref, *, tp, pos_boundary, valid_count):
    """Flat path: pixels of all batch elements folded onto lanes (padded)."""
    p = pl.program_id(0)

    x = x_ref[...].astype(jnp.bfloat16)                      # (C, tp)
    h1 = jnp.dot(w1_ref[...], x, preferred_element_type=jnp.float32)
    h1 = jnp.maximum(h1 + b1_ref[...], 0.0).astype(jnp.bfloat16)
    h2 = jnp.dot(w2_ref[...], h1, preferred_element_type=jnp.float32)
    h2 = jnp.maximum(h2 + b2_ref[...], 0.0)
    o = jnp.sum(h2 * w3_ref[...], axis=0, keepdims=True) + b3_ref[0, 0]

    z = -o
    sp = jnp.maximum(z, 0.0) + jnp.log1p(jnp.exp(-jnp.abs(z)))

    # Global pixel index of each lane decides pos/neg half and padding mask.
    g = p * tp + jax.lax.broadcasted_iota(jnp.int32, (1, tp), 1)
    contrib = jnp.where(g < pos_boundary, LOG2 - sp, sp + o - LOG2)
    out_ref[...] = jnp.where(g < valid_count, contrib, 0.0)


# --------------------------------------------------------------------------- #
# Helpers
# --------------------------------------------------------------------------- #
def _choose_tile(hw, pref):
    """Largest multiple-of-128 divisor of hw that is <= pref; None if none."""
    best = None
    if hw % 128 == 0:
        t = 128
        while t <= min(hw, pref):
            if hw % t == 0:
                best = t
            t += 128
    return best


def _x_block_spec(block_shape, index_map, buffers):
    """x BlockSpec with N-deep buffering when requested and supported."""
    buffered = getattr(pl, "Buffered", None)
    if buffers != 2 and buffered is not None:
        try:
            return pl.BlockSpec(block_shape, index_map,
                                pipeline_mode=buffered(buffers))
        except TypeError:  # runtime without pipeline_mode kwarg
            pass
    return pl.BlockSpec(block_shape, index_map)


def _vmem_limit(C, C1, C2, tp, x_itemsize, x_buffers):
    """Right-sized VMEM request: x buffers + weights + intermediates, 2x margin."""
    x_buf = x_buffers * C * tp * x_itemsize
    w_buf = 2 * ((C1 * C + C2 * C1) * 2 + (C1 + 2 * C2 + 1) * 4)
    out_buf = 2 * tp * 4
    scratch = tp * (C * 2 + C1 * 2 + C2 * 4)   # bf16 x copy, bf16 h1, f32 h2
    est = x_buf + w_buf + out_buf + scratch
    return int(min(max(2 * est, 8 * 1024 * 1024), 64 * 1024 * 1024))


def _weight_specs(C, C1, C2, index_map):
    return [
        pl.BlockSpec((C1, C), index_map),                    # w1 (bf16)
        pl.BlockSpec((C1, 1), index_map),                    # b1
        pl.BlockSpec((C2, C1), index_map),                   # w2 (bf16)
        pl.BlockSpec((C2, 1), index_map),                    # b2
        pl.BlockSpec((C2, 1), index_map),                    # w3
        pl.BlockSpec(memory_space=pltpu.MemorySpace.SMEM),   # b3 scalar
    ]


# --------------------------------------------------------------------------- #
# Wrapper
# --------------------------------------------------------------------------- #
def mine_forward(x_nchw, params, *, pref_tile=1024, x_buffers=3):
    """Returns (-difference, measure_est) exactly as Mine2.forward(measure='JSD')."""
    w1, b1, w2, b2, w3, b3 = params
    N, C, H, W = x_nchw.shape
    assert N % 2 == 0, "JSD split needs an even batch"
    assert pref_tile % 128 == 0
    HW = H * W
    C1, C2 = w1.shape[0], w2.shape[0]
    half = N // 2

    # Weights to bf16 once (tiny); biases / w3 / b3 stay f32.
    w1b = w1.astype(jnp.bfloat16)
    w2b = w2.astype(jnp.bfloat16)
    x_item = jnp.dtype(x_nchw.dtype).itemsize

    flops = 2 * N * HW * (C * C1 + C1 * C2 + C2)
    w_bytes = (w1b.size + w2b.size) * 2 + (b1.size + b2.size + w3.size + b3.size) * 4

    tp = _choose_tile(HW, pref_tile)
    if tp is not None:
        # ---------------- Fast path: NCHW kept, free reshape ----------------
        x3d = x_nchw.reshape(N, C, HW)
        num_p = HW // tp
        xb = max(2, min(x_buffers, N * num_p))
        cost = pl.CostEstimate(
            flops=flops, transcendentals=2 * N * HW,
            bytes_accessed=x3d.size * x_item + N * HW * 4 + w_bytes)

        contrib = pl.pallas_call(
            _mine_kernel_nchw,
            out_shape=jax.ShapeDtypeStruct((N, 1, HW), jnp.float32),
            grid_spec=pltpu.PrefetchScalarGridSpec(
                num_scalar_prefetch=0,
                grid=(N, num_p),
                in_specs=[_x_block_spec((1, C, tp), lambda n, p: (n, 0, p), xb)]
                         + _weight_specs(C, C1, C2, lambda n, p: (0, 0)),
                out_specs=pl.BlockSpec((1, 1, tp), lambda n, p: (n, 0, p)),
            ),
            compiler_params=pltpu.CompilerParams(
                dimension_semantics=("parallel", "parallel"),
                vmem_limit_bytes=_vmem_limit(C, C1, C2, tp, x_item, xb)),
            cost_estimate=cost,
        )(x3d, w1b, b1, w2b, b2, w3, b3)
        contrib = contrib.reshape(N, HW)
    else:
        # -------- Flat path: HW < 128 or not a multiple of 128 --------------
        # One HBM transpose pass buys full 128-lane density for tiny/odd HW.
        total = N * HW
        tp_b = min(pref_tile, 128 * pl.cdiv(total, 128))
        num_tiles = pl.cdiv(total, tp_b)
        padded = num_tiles * tp_b
        xb = max(2, min(x_buffers, num_tiles))

        x2d = jnp.transpose(x_nchw.reshape(N, C, HW), (1, 0, 2)).reshape(C, total)
        if padded > total:
            x2d = jnp.pad(x2d, ((0, 0), (0, padded - total)))

        kernel = functools.partial(_mine_kernel_flat, tp=tp_b,
                                   pos_boundary=half * HW, valid_count=total)
        cost = pl.CostEstimate(
            flops=flops, transcendentals=2 * total,
            bytes_accessed=x2d.size * x_item + padded * 4 + w_bytes)

        out = pl.pallas_call(
            kernel,
            out_shape=jax.ShapeDtypeStruct((1, padded), jnp.float32),
            grid_spec=pltpu.PrefetchScalarGridSpec(
                num_scalar_prefetch=0,
                grid=(num_tiles,),
                in_specs=[_x_block_spec((C, tp_b), lambda p: (0, p), xb)]
                         + _weight_specs(C, C1, C2, lambda p: (0, 0)),
                out_specs=pl.BlockSpec((1, tp_b), lambda p: (0, p)),
            ),
            compiler_params=pltpu.CompilerParams(
                dimension_semantics=("parallel",),
                vmem_limit_bytes=_vmem_limit(C, C1, C2, tp_b, x_item, xb)),
            cost_estimate=cost,
        )(x2d, w1b, b1, w2b, b2, w3, b3)
        contrib = out[0, :total].reshape(N, HW)

    # Cheap f32 epilogue: means over the two batch halves.
    e_pos_mean = jnp.mean(contrib[:half])
    e_neg_mean = jnp.mean(contrib[half:])
    difference = e_pos_mean - e_neg_mean
    measure_est = 0.5 * difference
    return -difference, measure_est


# --------------------------------------------------------------------------- #
# Pure-JAX reference & init
# --------------------------------------------------------------------------- #
def _reference(x_nchw, params, matmul_dtype=jnp.float32):
    """Pure-JAX reference of Mine2.forward(measure='JSD').

    matmul_dtype=jnp.bfloat16 mirrors the kernel's precision policy exactly
    (bf16 matmul operands, f32 accumulation, f32 elementwise)."""
    w1, b1, w2, b2, w3, b3 = params
    N, C, H, W = x_nchw.shape
    md = matmul_dtype
    x = x_nchw.reshape(N, C, H * W)
    h1 = jnp.einsum('oc,ncp->nop', w1.astype(md), x.astype(md),
                    preferred_element_type=jnp.float32) + b1[None]
    h1 = jax.nn.relu(h1)
    h2 = jnp.einsum('oc,ncp->nop', w2.astype(md), h1.astype(md),
                    preferred_element_type=jnp.float32) + b2[None]
    h2 = jax.nn.relu(h2)
    o = jnp.sum(h2 * w3[None, :, :], axis=1) + b3[0, 0]     # (N, HW)

    half = N // 2
    sp = jax.nn.softplus(-o)
    e_pos = LOG2 - sp[:half]
    e_neg = sp[half:] + o[half:] - LOG2
    difference = e_pos.mean() - e_neg.mean()
    return -difference, 0.5 * difference


def init_params(key, c_in, c1, c2):
    """PyTorch Conv2d-style init (uniform +-1/sqrt(fan_in)).
    Weights stored conv-style (out_channels, in_channels); w3 as (c2, 1)."""
    ks = jax.random.split(key, 6)

    def u(k, shape, fan_in):
        bound = 1.0 / math.sqrt(fan_in)
        return jax.random.uniform(k, shape, jnp.float32, -bound, bound)

    w1 = u(ks[0], (c1, c_in), c_in)
    b1 = u(ks[1], (c1, 1), c_in)
    w2 = u(ks[2], (c2, c1), c1)
    b2 = u(ks[3], (c2, 1), c1)
    w3 = u(ks[4], (c2, 1), c2)
    b3 = u(ks[5], (1, 1), c2)
    return (w1, b1, w2, b2, w3, b3)


# --------------------------------------------------------------------------- #
# Demo / checks
# --------------------------------------------------------------------------- #
if __name__ == "__main__":
    # Small, deliberately non-128-aligned channel stack standing in for the
    # module's (514, 514, 50, 1) — exercises padded-sublane / MXU paths.
    N, C_IN, C1, C2 = 2, 66, 66, 10

    key = jax.random.PRNGKey(0)
    k_x1, k_x2, k_p = jax.random.split(key, 3)
    params = init_params(k_p, C_IN, C1, C2)
    fwd = jax.jit(lambda xx: mine_forward(xx, params))

    # --- Path A: HW a multiple of 128 (16x16 = 256) --------------------------
    x_a = jax.random.normal(k_x1, (N, C_IN, 16, 16), jnp.float32)
    neg_diff_a, est_a = jax.block_until_ready(fwd(x_a))
    ref_bf_a = _reference(x_a, params, jnp.bfloat16)
    np.testing.assert_allclose(np.asarray(neg_diff_a), np.asarray(ref_bf_a[0]),
                               rtol=1e-2, atol=5e-3)
    np.testing.assert_allclose(np.asarray(est_a), np.asarray(ref_bf_a[1]),
                               rtol=1e-2, atol=5e-3)
    ref_f32_a = _reference(x_a, params, jnp.float32)
    np.testing.assert_allclose(np.asarray(neg_diff_a), np.asarray(ref_f32_a[0]),
                               rtol=5e-2, atol=5e-2)
    np.testing.assert_allclose(np.asarray(est_a), np.asarray(ref_f32_a[1]),
                               rtol=5e-2, atol=5e-2)

    # --- Path B: HW not a multiple of 128 (7x7 = 49) -> flat/padded layout ---
    x_b = jax.random.normal(k_x2, (N, C_IN, 7, 7), jnp.float32)
    neg_diff_b, est_b = jax.block_until_ready(fwd(x_b))
    ref_bf_b = _reference(x_b, params, jnp.bfloat16)
    np.testing.assert_allclose(np.asarray(neg_diff_b), np.asarray(ref_bf_b[0]),
                               rtol=1e-2, atol=5e-3)
    np.testing.assert_allclose(np.asarray(est_b), np.asarray(ref_bf_b[1]),
                               rtol=1e-2, atol=5e-3)
    ref_f32_b = _reference(x_b, params, jnp.float32)
    np.testing.assert_allclose(np.asarray(neg_diff_b), np.asarray(ref_f32_b[0]),
                               rtol=5e-2, atol=5e-2)
    np.testing.assert_allclose(np.asarray(est_b), np.asarray(ref_f32_b[1]),
                               rtol=5e-2, atol=5e-2)

    print("KERNEL_OK")
</pallas_src>

<mosaic_0001>
module attributes {stable_mosaic.version = 11 : i64} {
  func.func @_mine_kernel_nchw(%arg0: i32, %arg1: i32, %arg2: memref<1x66x256xf32, #tpu.memory_space<vmem>>, %arg3: memref<66x66xbf16, #tpu.memory_space<vmem>>, %arg4: memref<66x1xf32, #tpu.memory_space<vmem>>, %arg5: memref<10x66xbf16, #tpu.memory_space<vmem>>, %arg6: memref<10x1xf32, #tpu.memory_space<vmem>>, %arg7: memref<10x1xf32, #tpu.memory_space<vmem>>, %arg8: memref<1x1xf32, #tpu.memory_space<smem>>, %arg9: memref<1x1x256xf32, #tpu.memory_space<vmem>>) attributes {dimension_semantics = [#tpu.dimension_semantics<parallel>, #tpu.dimension_semantics<parallel>], iteration_bounds = array<i64: 2, 1>, scalar_prefetch = 0 : i64, scratch_operands = 0 : i64, tpu.core_type = #tpu.core_type<tc>, window_params = [{transform_indices = @transform_0, window_bounds = array<i64: 1, 66, 256>}, {pipeline_mode = #tpu.pipeline_mode<synchronous>, transform_indices = @transform_1, window_bounds = array<i64: 66, 66>}, {pipeline_mode = #tpu.pipeline_mode<synchronous>, transform_indices = @transform_2, window_bounds = array<i64: 66, 1>}, {pipeline_mode = #tpu.pipeline_mode<synchronous>, transform_indices = @transform_3, window_bounds = array<i64: 10, 66>}, {pipeline_mode = #tpu.pipeline_mode<synchronous>, transform_indices = @transform_4, window_bounds = array<i64: 10, 1>}, {pipeline_mode = #tpu.pipeline_mode<synchronous>, transform_indices = @transform_5, window_bounds = array<i64: 10, 1>}, {transform_indices = @transform_6, window_bounds = array<i64: 1, 1>}, {transform_indices = @transform_7, window_bounds = array<i64: 1, 1, 256>}]} {
    %c0 = arith.constant 0 : index
    %c0_0 = arith.constant 0 : index
    %c0_1 = arith.constant 0 : index
    %0 = vector.load %arg2[%c0, %c0_0, %c0_1] : memref<1x66x256xf32, #tpu.memory_space<vmem>>, vector<1x66x256xf32>
    %1 = vector.shape_cast %0 : vector<1x66x256xf32> to vector<66x256xf32>
    %2 = arith.truncf %1 : vector<66x256xf32> to vector<66x256xbf16>
    %c0_2 = arith.constant 0 : index
    %c0_3 = arith.constant 0 : index
    %3 = vector.load %arg3[%c0_2, %c0_3] : memref<66x66xbf16, #tpu.memory_space<vmem>>, vector<66x66xbf16>
    %cst = arith.constant dense<0.000000e+00> : vector<66x256xf32>
    %4 = tpu.matmul %3, %2, %cst {dimension_numbers = #tpu.dot_dimension_numbers<[1], [0], [0], [1], [0, 0, 1, 1], [], []>} : vector<66x66xbf16>, vector<66x256xbf16>, vector<66x256xf32> -> vector<66x256xf32>
    %c0_4 = arith.constant 0 : index
    %c0_5 = arith.constant 0 : index
    %5 = vector.load %arg4[%c0_4, %c0_5] : memref<66x1xf32, #tpu.memory_space<vmem>>, vector<66x1xf32>
    %6 = vector.broadcast %5 : vector<66x1xf32> to vector<66x256xf32>
    %7 = arith.addf %4, %6 : vector<66x256xf32>
    %cst_6 = arith.constant 0.000000e+00 : f32
    %8 = vector.broadcast %cst_6 : f32 to vector<66x256xf32>
    %9 = arith.maximumf %7, %8 : vector<66x256xf32>
    %10 = arith.truncf %9 : vector<66x256xf32> to vector<66x256xbf16>
    %c0_7 = arith.constant 0 : index
    %c0_8 = arith.constant 0 : index
    %11 = vector.load %arg5[%c0_7, %c0_8] : memref<10x66xbf16, #tpu.memory_space<vmem>>, vector<10x66xbf16>
    %cst_9 = arith.constant dense<0.000000e+00> : vector<10x256xf32>
    %12 = tpu.matmul %11, %10, %cst_9 {dimension_numbers = #tpu.dot_dimension_numbers<[1], [0], [0], [1], [0, 0, 1, 1], [], []>} : vector<10x66xbf16>, vector<66x256xbf16>, vector<10x256xf32> -> vector<10x256xf32>
    %c0_10 = arith.constant 0 : index
    %c0_11 = arith.constant 0 : index
    %13 = vector.load %arg6[%c0_10, %c0_11] : memref<10x1xf32, #tpu.memory_space<vmem>>, vector<10x1xf32>
    %14 = vector.broadcast %13 : vector<10x1xf32> to vector<10x256xf32>
    %15 = arith.addf %12, %14 : vector<10x256xf32>
    %cst_12 = arith.constant 0.000000e+00 : f32
    %16 = vector.broadcast %cst_12 : f32 to vector<10x256xf32>
    %17 = arith.maximumf %15, %16 : vector<10x256xf32>
    %c0_13 = arith.constant 0 : index
    %c0_14 = arith.constant 0 : index
    %18 = vector.load %arg7[%c0_13, %c0_14] : memref<10x1xf32, #tpu.memory_space<vmem>>, vector<10x1xf32>
    %19 = vector.broadcast %18 : vector<10x1xf32> to vector<10x256xf32>
    %20 = arith.mulf %17, %19 : vector<10x256xf32>
    %cst_15 = arith.constant dense<0.000000e+00> : vector<256xf32>
    %21 = vector.multi_reduction <add>, %20, %cst_15 [0] : vector<10x256xf32> to vector<256xf32>
    %22 = vector.shape_cast %21 : vector<256xf32> to vector<1x256xf32>
    %c0_16 = arith.constant 0 : index
    %c0_17 = arith.constant 0 : index
    %23 = memref.load %arg8[%c0_16, %c0_17] : memref<1x1xf32, #tpu.memory_space<smem>>
    %24 = vector.broadcast %23 : f32 to vector<1x256xf32>
    %25 = arith.addf %22, %24 : vector<1x256xf32>
    %cst_18 = arith.constant 0.000000e+00 : f32
    %26 = vector.broadcast %cst_18 : f32 to vector<1x256xf32>
    %27 = arith.subf %26, %25 : vector<1x256xf32>
    %cst_19 = arith.constant 0.000000e+00 : f32
    %28 = vector.broadcast %cst_19 : f32 to vector<1x256xf32>
    %29 = arith.maximumf %27, %28 : vector<1x256xf32>
    %30 = math.absf %27 : vector<1x256xf32>
    %cst_20 = arith.constant 0.000000e+00 : f32
    %31 = vector.broadcast %cst_20 : f32 to vector<1x256xf32>
    %32 = arith.subf %31, %30 : vector<1x256xf32>
    %33 = math.exp %32 : vector<1x256xf32>
    %34 = math.log1p %33 : vector<1x256xf32>
    %35 = arith.addf %29, %34 : vector<1x256xf32>
    %c1_i32 = arith.constant 1 : i32
    %36 = arith.cmpi slt, %arg0, %c1_i32 : i32
    %cst_21 = arith.constant 0.693147182 : f32
    %37 = vector.broadcast %cst_21 : f32 to vector<1x256xf32>
    %38 = arith.subf %37, %35 : vector<1x256xf32>
    %39 = arith.addf %35, %25 : vector<1x256xf32>
    %cst_22 = arith.constant 0.693147182 : f32
    %40 = vector.broadcast %cst_22 : f32 to vector<1x256xf32>
    %41 = arith.subf %39, %40 : vector<1x256xf32>
    %42 = arith.select %36, %38, %41 : vector<1x256xf32>
    %c0_23 = arith.constant 0 : index
    %c0_24 = arith.constant 0 : index
    %c0_25 = arith.constant 0 : index
    %43 = vector.load %arg9[%c0_23, %c0_24, %c0_25] : memref<1x1x256xf32, #tpu.memory_space<vmem>>, vector<1x1x256xf32>
    %44 = vector.shape_cast %43 : vector<1x1x256xf32> to vector<1x256xf32>
    %45 = vector.shape_cast %42 : vector<1x256xf32> to vector<1x1x256xf32>
    tpu.vector_store %arg9[%c0_23, %c0_24, %c0_25], %45 {strides = array<i32>} : memref<1x1x256xf32, #tpu.memory_space<vmem>>, vector<1x1x256xf32>,
    return
  }
  func.func @transform_0(%arg0: i32, %arg1: i32) -> (i32, i32, i32) {
    %c0_i32 = arith.constant 0 : i32
    %c0_i32_0 = arith.constant 0 : i32
    return %arg0, %c0_i32, %arg1 : i32, i32, i32
  }
  func.func @transform_1(%arg0: i32, %arg1: i32) -> (i32, i32) {
    %c0_i32 = arith.constant 0 : i32
    %c0_i32_0 = arith.constant 0 : i32
    %c0_i32_1 = arith.constant 0 : i32
    return %c0_i32, %c0_i32_0 : i32, i32
  }
  func.func @transform_2(%arg0: i32, %arg1: i32) -> (i32, i32) {
    %c0_i32 = arith.constant 0 : i32
    %c0_i32_0 = arith.constant 0 : i32
    %c0_i32_1 = arith.constant 0 : i32
    return %c0_i32, %c0_i32_0 : i32, i32
  }
  func.func @transform_3(%arg0: i32, %arg1: i32) -> (i32, i32) {
    %c0_i32 = arith.constant 0 : i32
    %c0_i32_0 = arith.constant 0 : i32
    %c0_i32_1 = arith.constant 0 : i32
    return %c0_i32, %c0_i32_0 : i32, i32
  }
  func.func @transform_4(%arg0: i32, %arg1: i32) -> (i32, i32) {
    %c0_i32 = arith.constant 0 : i32
    %c0_i32_0 = arith.constant 0 : i32
    %c0_i32_1 = arith.constant 0 : i32
    return %c0_i32, %c0_i32_0 : i32, i32
  }
  func.func @transform_5(%arg0: i32, %arg1: i32) -> (i32, i32) {
    %c0_i32 = arith.constant 0 : i32
    %c0_i32_0 = arith.constant 0 : i32
    %c0_i32_1 = arith.constant 0 : i32
    return %c0_i32, %c0_i32_0 : i32, i32
  }
  func.func @transform_6(%arg0: i32, %arg1: i32) -> (i32, i32) {
    %c0_i32 = arith.constant 0 : i32
    %c0_i32_0 = arith.constant 0 : i32
    %c0_i32_1 = arith.constant 0 : i32
    return %c0_i32, %c0_i32_0 : i32, i32
  }
  func.func @transform_7(%arg0: i32, %arg1: i32) -> (i32, i32, i32) {
    %c0_i32 = arith.constant 0 : i32
    %c0_i32_0 = arith.constant 0 : i32
    return %arg0, %c0_i32, %arg1 : i32, i32, i32
  }
}

</mosaic_0001>

<bundles_post_ra>
// kernel: _lambda_.1
= control target key start
LH: loop header
LB: loop body
LE: loop exit
PB: predicated region body
PF: predicated region fallthrough
CT: control target
= control target key end

     0   :  { %s961_s26 = smov 0   ;;  %s963_s27 = smov 0   ;;  %s1101_s0 = inlined_call_operand.vmem [shape: f32[2,66,256], index: 0, kind: input, shape index: {}]   ;;  %s1102_s1 = inlined_call_operand.vmem [shape: bf16[66,66], index: 1, kind: input, shape index: {}]   ;;  %s1103_s2 = inlined_call_operand.vmem [shape: f32[66,1], index: 2, kind: input, shape index: {}]   ;;  %s1104_s3 = inlined_call_operand.vmem [shape: bf16[10,66], index: 3, kind: input, shape index: {}]   ;;  %s1105_s4 = inlined_call_operand.vmem [shape: f32[10,1], index: 4, kind: input, shape index: {}]   ;;  %s1106_s5 = inlined_call_operand.vmem [shape: f32[10,1], index: 5, kind: input, shape index: {}]   ;;  %s1107_s6 = inlined_call_operand.<no memory space> [shape: f32[1,1], index: 6, kind: input, shape index: {}]   ;;  %s1108_s7 = inlined_call_operand.vmem [shape: f32[2,1,256], index: 7, kind: output, shape index: {}]  }
   0x1   :  { %12 = sst [smem:[#allocation2]] %s1107_s6  ;;  %s965_s28 = smov 0  }
   0x2 LB: > { %s30_s6 = sadd.s32 1, %s910_s27  ;;  %p828_p0 = scmp.ge.s32.totalorder %s914_s28, 1  ;;  %s914_s28 = sphi %s965_s28, %s18_s28   ;;  %s910_s27 = sphi %s963_s27, %s1110_s27   ;;  %s906_s26 = sphi %s961_s26, %s1109_s26  }
   0x3   : > { %p32_p1 = scmp.ge.s32.totalorder %s30_s6, 2  ;;  %p259_p2 = scmp.lt.s32.totalorder %s914_s28, 3 }
   0x5   : > { %s1112_s6 = smov (%p32_p1, %s30_s6), 0  ;;  %p260_p3 = pnand %p828_p0, %p259_p2 }
   0x6   : > { %p299_p4 = scmp.lt.s32.totalorder (!%p260_p3), %s906_s26, 1  ;;  %v916_v0 = vmov (!%p260_p3), 0   ;;  %v355_v1 = vld [vmem:[%s1103_s2] sm:$0xff] (!%p260_p3)  ;;  %v357_v2 = vld [vmem:[%s1103_s2 + $0x10] sm:$0xff] (!%p260_p3)  ;;  %v356_v3 = vld [vmem:[%s1103_s2 + $0x8] sm:$0xff] (!%p260_p3)  ;;  %vm448_vm0 = vcmask (!%p260_p3), 1040384  }
   0x7   : > { %263 = sbr.rel (%p260_p3) target bundleno = 584 (0x248), region = 48  ;;  %487 = vmatprep.mubr.bf16.mxu0 (!%p260_p3), %v916_v0  ;;  %876 = vset.pattern.permute.xlu0 (!%p260_p3), %v916_v0  ;;  %v358_v4 = vld [vmem:[%s1103_s2 + $0x18] sm:$0xff] (!%p260_p3)  ;;  %v359_v18 = vld [vmem:[%s1103_s2 + $0x20] sm:$0xff] (!%p260_p3)  ;;  %v360_v25 = vld [vmem:[%s1103_s2 + $0x28] sm:$0xff] (!%p260_p3)  ;;  %vm432_vm1 = vcmask (!%p260_p3), 539648   ;;  %vm655_vm2 = vcmask (!%p260_p3), 1041408  }
   0x8   : > { %877 = vset.pattern.permute.xlu1 (!%p260_p3), %v916_v0  ;;  %624 = vmatprep.mubr.bf16.mxu1 (!%p260_p3), %v916_v0  ;;  %v361_v26 = vld [vmem:[%s1103_s2 + $0x30] sm:$0xff] (!%p260_p3)  ;;  %v362_v28 = vld [vmem:[%s1103_s2 + $0x38] sm:$0xff] (!%p260_p3)  ;;  %v363_v34 = vld [vmem:[%s1103_s2 + $0x40] sm:$0x3] (!%p260_p3)  ;;  %s672_s11 = sld [smem:[#allocation2]] (!%p260_p3) }
   0x9   : > { %366 = vperm.xlu0 (!%p260_p3), %876, %v355_v1   ;;  %376 = vperm.xlu1 (!%p260_p3), %877, %v357_v2   ;;  %v567_v36 = vld [vmem:[%s1105_s4 + $0x8] sm:$0x3] (!%p260_p3)  ;;  %v566_v39 = vld [vmem:[%s1105_s4] sm:$0xff] (!%p260_p3)  ;;  %v880_v45 = vld [vmem:[%s1102_s1 + $0x10] sm:$0xff] (!%p260_p3)  }
   0xa   : > { %v640_v40 = vld [vmem:[%s1106_s5 + $0x8] sm:$0x3] (!%p260_p3)  ;;  %v878_v42 = vld [vmem:[%s1102_s1] sm:$0xff] (!%p260_p3)   ;;  %v881_v46 = vld [vmem:[%s1102_s1 + $0x18] sm:$0xff] (!%p260_p3)  }
   0xb   : > { %v639_v43 = vld [vmem:[%s1106_s5] sm:$0xff] (!%p260_p3)  ;;  %v879_v44 = vld [vmem:[%s1102_s1 + $0x8] sm:$0xff] (!%p260_p3)  }
   0xc   : > { %v882_v47 = vld [vmem:[%s1102_s1 + $0x20] ss:$0 sps:$4 sm:$0x11] (!%p260_p3)  }
   0xd   : > { %371 = vperm.xlu0 (!%p260_p3), %876, %v356_v3   ;;  %381 = vperm.xlu1 (!%p260_p3), %877, %v358_v4  }
   0xe   : > { %s987_s29 = scalar_select %p299_p4, %s906_s26, 1 }
   0xf   : > { %s715_s12 = scalar_select %p299_p4, 1, 0 }
  0x10   : > { %s849_s30 = smul.u32 144, %s987_s29  ;;  %s830_s26 = sshll.u32 %s987_s29, 1 }
  0x11   : > { %386 = vperm.xlu0 %876, %v359_v18   ;;  %391 = vperm.xlu1 %877, %v360_v25   ;;  %s315_s15 = scalar_lea.vmem %s1108_s7, %s830_s26 }
  0x12   : > { %s1001_s14 = scalar_lea.vmem %s1101_s0, %s849_s30 }
  0x13   : > { %v319_v5 = vld [vmem:[%s1001_s14 + $0x8] sm:$0xff]  ;;  %v321_v6 = vld [vmem:[%s1001_s14 + $0x18] sm:$0xff]  ;;  %v318_v7 = vld [vmem:[%s1001_s14] sm:$0xff] }
  0x14   : > { %v337_v8 = vpack.c.bf16 %v321_v6, %v319_v5  ;;  %v320_v9 = vld [vmem:[%s1001_s14 + $0x10] sm:$0xff]  ;;  %v323_v10 = vld [vmem:[%s1001_s14 + $0x28] sm:$0xff]  ;;  %v325_v11 = vld [vmem:[%s1001_s14 + $0x38] sm:$0xff] }
  0x15   : > { %v336_v12 = vpack.c.bf16 %v320_v9, %v318_v7  ;;  %v339_v13 = vpack.c.bf16 %v325_v11, %v323_v10  ;;  %v322_v14 = vld [vmem:[%s1001_s14 + $0x20] sm:$0xff]  ;;  %v324_v15 = vld [vmem:[%s1001_s14 + $0x30] sm:$0xff]  ;;  %v327_v16 = vld [vmem:[%s1001_s14 + $0x48] sm:$0xff]  ;;  %396 = vperm.xlu0 %876, %v361_v26   ;;  %401 = vperm.xlu1 %877, %v362_v28  }
  0x16   : > { %455 = vmatprep.subr.bf16.mxu0 %v337_v8  ;;  %v329_v17 = vld [vmem:[%s1001_s14 + $0x58] sm:$0xff]  ;;  %v338_v19 = vpack.c.bf16 %v324_v15, %v322_v14  ;;  %v326_v21 = vld [vmem:[%s1001_s14 + $0x40] sm:$0xff]  ;;  %v328_v22 = vld [vmem:[%s1001_s14 + $0x50] sm:$0xff] }
  0x17   : > { %456 = vmatpush1.bf16.msra.mxu0 %v336_v12  ;;  %v341_v20 = vpack.c.bf16 %v329_v17, %v327_v16  ;;  %v331_v23 = vld [vmem:[%s1001_s14 + $0x68] sm:$0xff]  ;;  %v333_v24 = vld [vmem:[%s1001_s14 + $0x78] sm:$0xff]  ;;  %v340_v27 = vpack.c.bf16 %v328_v22, %v326_v21  ;;  %v330_v30 = vld [vmem:[%s1001_s14 + $0x60] sm:$0xff] }
  0x18   : > { %457 = vmatprep.subr.bf16.mxu0 %v339_v13  ;;  %v343_v29 = vpack.c.bf16 %v333_v24, %v331_v23  ;;  %v332_v31 = vld [vmem:[%s1001_s14 + $0x70] sm:$0xff]  ;;  %v335_v32 = vld [vmem:[%s1001_s14 + $0x88] sm:$0x3]  ;;  %v334_v33 = vld [vmem:[%s1001_s14 + $0x80] sm:$0x3] }
  0x19   : > { %v342_v35 = vpack.c.bf16 %v332_v31, %v330_v30  ;;  %v345_v37 = vpack.c.bf16 %v335_v32, %v335_v32  ;;  %v344_v38 = vpack.c.bf16 %v334_v33, %v334_v33  ;;  %406 = vperm.xlu0 %876, %v363_v34   ;;  %575 = vperm.xlu1 %877, %v567_v36  }
  0x1b   : > { %458 = vmatpush1.bf16.msra.mxu0 %v338_v19  ;;  %v450_v41 = vsel %vm448_vm0, %v344_v38, 0 }
  0x1c   : > { %459 = vmatprep.subr.bf16.mxu0 %v341_v20 }
  0x1d   : > { %570 = vperm.xlu0 %876, %v566_v39   ;;  %648 = vperm.xlu1 %877, %v640_v40  }
  0x1f   : > { %460 = vmatpush1.bf16.msra.mxu0 %v340_v27 }
  0x20   : > { %461 = vmatprep.subr.bf16.mxu0 %v343_v29 }
  0x21   : > { %643 = vperm.xlu0 %876, %v639_v43  }
  0x23   : > { %462 = vmatpush1.bf16.msra.mxu0 %v342_v35 }
  0x24   : > { %836 = vmatprep.subr.msk.bf16.mxu0 %vm448_vm0, %v345_v37 }
  0x27   : > { %464 = vmatpush1.bf16.msra.mxu0 %v450_v41 }
  0x2a   : > { %837 = vmatmul.mubr.msk.bf16.vlgmr.msra.gmra.mrb[0].mxu0 %vm432_vm1, %v878_v42 }
  0x2b   : > { %497 = vmatprep.mubr.bf16.mxu0 %v916_v0 }
  0x32   : > { %838 = vmatmul.mubr.msk.bf16.gmra.mrb[4].mxu0 %vm432_vm1, %v879_v44 }
  0x33   : > { %507 = vmatprep.mubr.bf16.mxu0 %v916_v0 }
  0x3a   : > { %839 = vmatmul.mubr.msk.bf16.gmra.mrb[8].mxu0 %vm432_vm1, %v880_v45 }
  0x3b   : > { %517 = vmatprep.mubr.bf16.mxu0 %v916_v0 }
  0x42   : > { %840 = vmatmul.mubr.msk.bf16.gmra.mrb[12].mxu0 %vm432_vm1, %v881_v46 }
  0x43   : > { %527 = vmatprep.mubr.bf16.mxu0 %v916_v0 }
  0x4a   : > { %841 = vmatmul.mubr.msk.bf16.gmra.mrb[16].mxu0 %vm432_vm1, %v882_v47 }
  0x88   : > { %v367_v48 = vpop.permute.xlu0 %366  ;;  %v377_v57 = vpop.permute.xlu1 %376 }
  0x8c   : > { %v372_v52 = vpop.permute.xlu0 %371  ;;  %v382_v4 = vpop.permute.xlu1 %381 }
  0x90   : > { %v387_v15 = vpop.permute.xlu0 %386  ;;  %v392_v20 = vpop.permute.xlu1 %391 }
  0x94   : > { %v397_v31 = vpop.permute.xlu0 %396  ;;  %v402_v36 = vpop.permute.xlu1 %401 }
  0x98   : > { %v407_v47 = vpop.permute.xlu0 %406 }
  0xfd   : > { %v489_v49 = vpop.f32.mrb[0].mxu0 }
  0xfe   : > { %v490_v50 = vadd.f32 %v489_v49, %v367_v48  ;;  %v491_v51 = vpop.f32.mrb[1].mxu0 }
  0xff   : > { %v492_v53 = vadd.f32 %v491_v51, %v367_v48  ;;  %v493_v54 = vpop.f32.mrb[2].mxu0 }
 0x100   : > { %v494_v55 = vadd.f32 %v493_v54, %v372_v52  ;;  %v495_v56 = vpop.f32.mrb[3].mxu0  ;;  %v536_v59 = vmax.f32 %v490_v50, 0.0 }
 0x101   : > { %v496_v58 = vadd.f32 %v495_v56, %v372_v52  ;;  %v537_v61 = vmax.f32 %v492_v53, 0.0 }
 0x102   : > { %v538_v60 = vmax.f32 %v494_v55, 0.0 }
 0x103   : > { %v539_v62 = vmax.f32 %v496_v58, 0.0 }
 0x104   : > { %v554_v63 = vpack.c.bf16 %v538_v60, %v536_v59  ;;  %v883_v60 = vld [vmem:[%s1104_s3] sm:$0x1f]  }
 0x105   : > { %v499_v0 = vpop.f32.mrb[4].mxu0  ;;  %v555_v1 = vpack.c.bf16 %v539_v62, %v537_v61  ;;  %v576_v61 = vpop.permute.xlu1 %575 }
 0x106   : > { %v500_v2 = vadd.f32 %v499_v0, %v377_v57  ;;  %v501_v3 = vpop.f32.mrb[5].mxu0  ;;  %v571_v62 = vpop.permute.xlu0 %570 }
 0x107   : > { %v502_v5 = vadd.f32 %v501_v3, %v377_v57  ;;  %v503_v6 = vpop.f32.mrb[6].mxu0  ;;  %592 = vmatprep.subr.bf16.mxu1 %v555_v1 }
 0x108   : > { %v504_v7 = vadd.f32 %v503_v6, %v382_v4  ;;  %v505_v8 = vpop.f32.mrb[7].mxu0  ;;  %593 = vmatpush1.bf16.msra.mxu1 %v554_v63  ;;  %v540_v10 = vmax.f32 %v500_v2, 0.0 }
 0x109   : > { %v506_v9 = vadd.f32 %v505_v8, %v382_v4  ;;  %v541_v12 = vmax.f32 %v502_v5, 0.0 }
 0x10a   : > { %v542_v11 = vmax.f32 %v504_v7, 0.0 }
 0x10b   : > { %v543_v13 = vmax.f32 %v506_v9, 0.0 }
 0x10c   : > { %v556_v14 = vpack.c.bf16 %v542_v11, %v540_v10  ;;  %v649_v10 = vpop.permute.xlu1 %648 }
 0x10d   : > { %v557_v16 = vpack.c.bf16 %v543_v13, %v541_v12  ;;  %v509_v17 = vpop.f32.mrb[8].mxu0  ;;  %v644_v12 = vpop.permute.xlu0 %643 }
 0x10e   : > { %v510_v18 = vadd.f32 %v509_v17, %v387_v15  ;;  %v511_v19 = vpop.f32.mrb[9].mxu0 }
 0x10f   : > { %v512_v21 = vadd.f32 %v511_v19, %v387_v15  ;;  %v513_v22 = vpop.f32.mrb[10].mxu0  ;;  %594 = vmatprep.subr.bf16.mxu1 %v557_v16 }
 0x110   : > { %v514_v23 = vadd.f32 %v513_v22, %v392_v20  ;;  %v515_v24 = vpop.f32.mrb[11].mxu0  ;;  %595 = vmatpush1.bf16.msra.mxu1 %v556_v14  ;;  %v544_v26 = vmax.f32 %v510_v18, 0.0 }
 0x111   : > { %v516_v25 = vadd.f32 %v515_v24, %v392_v20  ;;  %v545_v28 = vmax.f32 %v512_v21, 0.0 }
 0x112   : > { %v546_v27 = vmax.f32 %v514_v23, 0.0 }
 0x113   : > { %v547_v29 = vmax.f32 %v516_v25, 0.0 }
 0x114   : > { %v558_v30 = vpack.c.bf16 %v546_v27, %v544_v26 }
 0x115   : > { %v559_v32 = vpack.c.bf16 %v547_v29, %v545_v28  ;;  %v519_v33 = vpop.f32.mrb[12].mxu0 }
 0x116   : > { %v520_v34 = vadd.f32 %v519_v33, %v397_v31  ;;  %v521_v35 = vpop.f32.mrb[13].mxu0 }
 0x117   : > { %v522_v37 = vadd.f32 %v521_v35, %v397_v31  ;;  %v523_v38 = vpop.f32.mrb[14].mxu0  ;;  %596 = vmatprep.subr.bf16.mxu1 %v559_v32 }
 0x118   : > { %v524_v39 = vadd.f32 %v523_v38, %v402_v36  ;;  %v525_v40 = vpop.f32.mrb[15].mxu0  ;;  %597 = vmatpush1.bf16.msra.mxu1 %v558_v30  ;;  %v548_v42 = vmax.f32 %v520_v34, 0.0  ;;  %v673_v30 = vstv %s672_s11 }
 0x119   : > { %v526_v41 = vadd.f32 %v525_v40, %v402_v36  ;;  %v549_v44 = vmax.f32 %v522_v37, 0.0 }
 0x11a   : > { %v550_v43 = vmax.f32 %v524_v39, 0.0 }
 0x11b   : > { %v551_v45 = vmax.f32 %v526_v41, 0.0 }
 0x11c   : > { %v560_v46 = vpack.c.bf16 %v550_v43, %v548_v42 }
 0x11d   : > { %v561_v48 = vpack.c.bf16 %v551_v45, %v549_v44  ;;  %v529_v49 = vpop.f32.mrb[16].mxu0 }
 0x11e   : > { %v530_v50 = vadd.f32 %v529_v49, %v407_v47  ;;  %v531_v51 = vpop.f32.mrb[17].mxu0 }
 0x11f   : > { %v532_v52 = vadd.f32 %v531_v51, %v407_v47  ;;  %v533_v53 = vpop.f32.mrb[18].mxu0  ;;  %598 = vmatprep.subr.bf16.mxu1 %v561_v48 }
 0x120   : > { %v552_v54 = vmax.f32 %v530_v50, 0.0  ;;  %v534_v55 = vpop.f32.mrb[19].mxu0  ;;  %599 = vmatpush1.bf16.msra.mxu1 %v560_v46 }
 0x121   : > { %v553_v56 = vmax.f32 %v532_v52, 0.0 }
 0x122   : > { %v562_v57 = vpack.c.bf16 %v552_v54, %v552_v54 }
 0x123   : > { %v563_v58 = vpack.c.bf16 %v553_v56, %v553_v56 }
 0x124   : > { %v587_v59 = vsel %vm448_vm0, %v562_v57, 0 }
 0x125   : > { %843 = vmatprep.subr.msk.bf16.mxu1 %vm448_vm0, %v563_v58  ;;  %v917_v58 = vmov 1966171168  }
 0x126   : > { %601 = vmatpush1.bf16.msra.mxu1 %v587_v59  ;;  %v724_v59 = vunpack.c.l.s4 %v917_v58 }
 0x129   : > { %844 = vmatmul.mubr.msk.bf16.vlgmr.msra.gmra.mrb[0].mxu1 %vm432_vm1, %v883_v60  ;;  %v726_v60 = vlaneseq }
 0x12b   : > { %vm740_vm6 = vcmp.lt.s32.totalorder %v726_v60, 256 }
 0x1fc   : > { %v626_v63 = vpop.f32.mrb[0].mxu1 }
 0x1fd   : > { %v627_v0 = vadd.f32 %v626_v63, %v571_v62  ;;  %v628_v1 = vpop.f32.mrb[1].mxu1 }
 0x1fe   : > { %v629_v2 = vadd.f32 %v628_v1, %v571_v62  ;;  %v630_v3 = vpop.f32.mrb[2].mxu1 }
 0x1ff   : > { %v631_v4 = vadd.f32 %v630_v3, %v576_v61  ;;  %v632_v5 = vpop.f32.mrb[3].mxu1  ;;  %v635_v6 = vmax.f32 %v627_v0, 0.0  ;;  %v716_v3 = vstv %s715_s12 }
 0x200   : > { %v633_v7 = vadd.f32 %v632_v5, %v576_v61  ;;  %v636_v8 = vmax.f32 %v629_v2, 0.0  ;;  %vm717_vm5 = vcmp.eq.s32.totalorder %v716_v3, 1 }
 0x201   : > { %v637_v9 = vmax.f32 %v631_v4, 0.0  ;;  %v651_v14 = vmul.f32 %v644_v12, %v635_v6 }
 0x202   : > { %v638_v11 = vmax.f32 %v633_v7, 0.0  ;;  %v652_v16 = vmul.f32 %v644_v12, %v636_v8  ;;  %v725_v7 = vunpack.c.0.s8 %v724_v59  ;;  %v727_v8 = vshrl.u32 %v726_v60, 7 }
 0x203   : > { %v653_v13 = vmul.f32 %v649_v10, %v637_v9 }
 0x204   : > { %v654_v15 = vmul.f32 %v649_v10, %v638_v11 }
 0x205   : > { %v656_v17 = vsel %vm655_vm2, %v653_v13, 0.0 }
 0x206   : > { %v657_v18 = vadd.f32 %v656_v17, %v651_v14  ;;  %v664_v19 = vsel %vm655_vm2, %v654_v15, 0.0  ;;  %v728_v15 = vsub.s32 %v725_v7, %v727_v8 }
 0x207   : > { %v665_v20 = vadd.f32 %v664_v19, %v652_v16 }
 0x208   : > { %v658_v21 = vrot.slane %v657_v18, 4 }
 0x209   : > { %v666_v22 = vrot.slane %v665_v20, 4 }
 0x20a   : > { %v659_v23 = vadd.f32 %v658_v21, %v657_v18 }
 0x20b   : > { %v667_v24 = vadd.f32 %v666_v22, %v665_v20 }
 0x20c   : > { %v660_v25 = vrot.slane %v659_v23, 2 }
 0x20d   : > { %v668_v26 = vrot.slane %v667_v24, 2 }
 0x20e   : > { %v661_v27 = vadd.f32 %v660_v25, %v659_v23 }
 0x20f   : > { %v669_v28 = vadd.f32 %v668_v26, %v667_v24 }
 0x210   : > { %v662_v29 = vrot.slane %v661_v27, 1 }
 0x211   : > { %v670_v31 = vrot.slane %v669_v28, 1 }
 0x212   : > { %v663_v32 = vadd.f32 %v662_v29, %v661_v27 }
 0x213   : > { %v671_v33 = vadd.f32 %v670_v31, %v669_v28 }
 0x214   : > { %v674_v34 = vadd.f32 %v673_v30, %v663_v32 }
 0x215   : > { %v675_v35 = vadd.f32 %v673_v30, %v671_v33 }
 0x216   : > { %v676_v36 = vsub.f32 0.0, %v674_v34 }
 0x217   : > { %v677_v37 = vsub.f32 0.0, %v675_v35 }
 0x218   : > { %v680_v38 = vand.u32 2147483647, %v676_v36  ;;  %v678_v61 = vmax.f32 %v676_v36, 0.0 }
 0x219   : > { %v681_v39 = vand.u32 2147483647, %v677_v37  ;;  %v679_v1 = vmax.f32 %v677_v37, 0.0 }
 0x21a   : > { %v682_v40 = vsub.f32 0.0, %v680_v38 }
 0x21b   : > { %v683_v41 = vsub.f32 0.0, %v681_v39 }
 0x21c   : > { %v684_v42 = vmul.f32 1.442695, %v682_v40 }
 0x21d   : > { %v686_v43 = vmul.f32 1.442695, %v683_v41 }
 0x21e   : > { %884 = vpow2.f32 %v684_v42 }
 0x21f   : > { %886 = vpow2.f32 %v686_v43 }
 0x228   : > { %v885_v44 = vpop.eup %884 }
 0x229   : > { %v887_v45 = vpop.eup %886  ;;  %v688_v46 = vadd.f32 1.0, %v885_v44  ;;  %v691_v48 = vmul.f32 -0.5, %v885_v44  ;;  %v694_v51 = vand.u32 2147483647, %v885_v44 }
 0x22a   : > { %v697_v47 = vadd.f32 1.0, %v887_v45  ;;  %v700_v49 = vmul.f32 -0.5, %v887_v45  ;;  %v703_v53 = vand.u32 2147483647, %v887_v45 }
 0x22b   : > { %888 = vlog2.f32 %v688_v46  ;;  %v692_v50 = vadd.f32 1.0, %v691_v48  ;;  %vm695_vm3 = vcmp.lt.f32.partialorder %v694_v51, 0.0004427343 }
 0x22c   : > { %890 = vlog2.f32 %v697_v47  ;;  %v701_v52 = vadd.f32 1.0, %v700_v49  ;;  %vm704_vm4 = vcmp.lt.f32.partialorder %v703_v53, 0.0004427343 }
 0x22d   : > { %v693_v57 = vmul.f32 %v885_v44, %v692_v50 }
 0x22e   : > { %v702_v63 = vmul.f32 %v887_v45, %v701_v52 }
 0x235   : > { %v889_v54 = vpop.eup %888 }
 0x236   : > { %v891_v55 = vpop.eup %890  ;;  %v690_v56 = vmul.f32 0.6931472, %v889_v54 }
 0x237   : > { %v699_v62 = vmul.f32 0.6931472, %v891_v55 }
 0x238   : > { %v696_v0 = vsel %vm695_vm3, %v693_v57, %v690_v56 }
 0x239   : > { %v706_v2 = vadd.f32 %v696_v0, %v678_v61  ;;  %v705_v4 = vsel %vm704_vm4, %v702_v63, %v699_v62 }
 0x23a   : > { %v707_v5 = vadd.f32 %v705_v4, %v679_v1 }
 0x23b   : > { %v711_v6 = vadd.f32 %v706_v2, %v674_v34  ;;  %v709_v10 = vsub.f32 0.6931472, %v706_v2 }
 0x23c   : > { %v712_v9 = vadd.f32 %v707_v5, %v675_v35  ;;  %v710_v12 = vsub.f32 0.6931472, %v707_v5 }
 0x23d   : > { %v845_v11 = vadd.f32 -0.6931472, %v711_v6 }
 0x23e   : > { %v846_v13 = vadd.f32 -0.6931472, %v712_v9 }
 0x23f   : > { %v718_v14 = vsel %vm717_vm5, %v709_v10, %v845_v11 }
 0x240   : > { %v719_v16 = vsel %vm717_vm5, %v710_v12, %v846_v13 }
 0x241   : > { %v722_v17 = vcombine.low %v718_v14, %v719_v16 }
 0x243   : > { %v729_v18 = vrot.slane %v722_v17, %v728_v15 }
 0x245   : > { %v736_v19 = vrot.slane %v729_v18, %v728_v15 }
 0x247   : > { %742 = vst.msk [vmem:[%s315_s15] sm:$0x3] %vm740_vm6, %v736_v19 }
 0x248 PF: > { %s18_s28 = sadd.s32 1, %s914_s28   ;;  %s1109_s26 = smov %s910_s27 }
 0x249   : > { %p15_p5 = scmp.ge.s32.totalorder %s18_s28, 4   ;;  %s1110_s27 = smov %s1112_s6 }
 0x24b   :  { %17 = sbr.rel (!%p15_p5) target bundleno = 2 (0x2), region = 78 }

</bundles_post_ra>
